<compile_context>
chip_gen: v7x
topology: tpu7x:2x2x1
jax: 0.10.0
libtpu: 0.0.40
codegen_flags: <defaults>
</compile_context>

<pallas_src>
import functools

import jax
import jax.numpy as jnp
from jax.experimental import pallas as pl
from jax.experimental.pallas import tpu as pltpu


_MAX_TILE_ROWS = 1024                       # measured tile-sweep plateau
_FALLBACK_VMEM_LIMIT = 48 * 1024 * 1024     # safe everywhere (v7x: 64 MiB physical)
_MAX_VMEM_LIMIT = 96 * 1024 * 1024          # ~75% of v5e/v6e's 128 MiB physical


def _vmem_limit_bytes():
    """Generation-aware scoped-VMEM limit (~75% of physical, capped at 96 MiB)."""
    try:
        phys = int(pltpu.get_tpu_info().vmem_capacity_bytes)
    except Exception:
        return _FALLBACK_VMEM_LIMIT
    return max(_FALLBACK_VMEM_LIMIT, min(int(0.75 * phys), _MAX_VMEM_LIMIT))


def _pick_tile_rows(rows, dim, itemsize, vmem_limit):
    """Largest sublane-aligned row tile fitting the VMEM budget.

    Real per-step footprint: 2x double-buffered input + 2x output tiles in the
    source dtype, plus ~2 full-tile f32 temporaries in the body.
    """
    packing = max(8, 32 // itemsize)                 # f32 -> 8, bf16 -> 16, int8 -> 32
    per_row_bytes = 4 * dim * itemsize + 2 * dim * 4
    budget = int(0.85 * vmem_limit)
    cap = (budget // per_row_bytes) // packing * packing
    cap = max(packing, min(cap, _MAX_TILE_ROWS))
    # Guarantee >=2 grid steps whenever there is enough work, so the "parallel"
    # row axis can actually be split across both v7x TensorCores.
    if rows >= 2 * packing:
        half = -(-rows // 2)
        half = -(-half // packing) * packing
        cap = min(cap, max(packing, half))
    # Don't tile past the real (sublane-aligned) row count.
    needed = -(-rows // packing) * packing
    return max(packing, min(cap, needed))


def _layernorm_kernel(x_ref, w_ref, b_ref, o_ref, *, eps):
    # x_ref: (tile_rows, dim); w_ref / b_ref: (1, dim) f32, VMEM-resident across
    # all grid steps (constant index_map).  NOTE: on the edge block, rows past
    # the real extent hold garbage; everything below is strictly per-row and
    # their stores are masked, so they cannot contaminate valid rows.
    x = x_ref[...].astype(jnp.float32)
    d = x.shape[-1]                                   # NOTE: d == 1 would divide by zero
    # Two-pass mean/var (numerically robust; matches torch.mean / torch.std).
    mean = jnp.mean(x, axis=-1, keepdims=True)
    xc = x - mean
    var = jnp.sum(xc * xc, axis=-1, keepdims=True) * (1.0 / (d - 1))  # unbiased (N-1)
    denom = jnp.sqrt(var) + eps                       # torch adds eps to std, not var
    # EUP approximate reciprocal + one Newton-Raphson step -> ~f32 accuracy,
    # no per-element VPU divide on the hot path.
    inv = pl.reciprocal(denom, approx=True)
    inv = inv * (2.0 - denom * inv)

    if o_ref.dtype == jnp.bfloat16:
        # bf16 affine path: v6e/v7x VALU is bf16-capable (2 elems/op), so the
        # per-element scale/shift stays HBM-bound on v7x.  Rounding is below
        # bf16 output precision.
        xn = xc.astype(jnp.bfloat16)
        w_b = w_ref[...].astype(jnp.bfloat16)
        b_b = b_ref[...].astype(jnp.bfloat16)
        o_ref[...] = (xn * inv.astype(jnp.bfloat16)) * w_b + b_b
    else:
        o_ref[...] = (xc * (w_ref[...] * inv) + b_ref[...]).astype(o_ref.dtype)


def rmsnorm(x, weight, bias, eps=1e-8):
    """x: (..., dim); weight, bias: (dim,). Returns same shape/dtype as x."""
    orig_shape = x.shape
    dim = orig_shape[-1]
    x2 = x.reshape(-1, dim)
    rows = x2.shape[0]

    itemsize = jnp.dtype(x2.dtype).itemsize
    vmem_limit = _vmem_limit_bytes()
    tile_rows = _pick_tile_rows(rows, dim, itemsize, vmem_limit)
    grid = -(-rows // tile_rows)                      # edge block masked by Pallas

    # Params pre-cast to f32 once in the wrapper; the constant index_map keeps
    # them VMEM-resident across all grid steps (one-time DMA).
    w2 = weight.astype(jnp.float32).reshape(1, dim)
    b2 = bias.astype(jnp.float32).reshape(1, dim)

    kernel = functools.partial(_layernorm_kernel, eps=eps)

    cost = pl.CostEstimate(
        flops=int(7 * rows * dim),
        transcendentals=int(2 * rows),
        bytes_accessed=int(2 * rows * dim * itemsize + 2 * dim * 4),
    )

    out = pl.pallas_call(
        kernel,
        out_shape=jax.ShapeDtypeStruct((rows, dim), x.dtype),
        grid_spec=pltpu.PrefetchScalarGridSpec(
            num_scalar_prefetch=0,
            grid=(grid,),
            in_specs=[
                pl.BlockSpec((tile_rows, dim), lambda i: (i, 0)),
                pl.BlockSpec((1, dim), lambda i: (0, 0)),
                pl.BlockSpec((1, dim), lambda i: (0, 0)),
            ],
            out_specs=pl.BlockSpec((tile_rows, dim), lambda i: (i, 0)),
        ),
        compiler_params=pltpu.CompilerParams(
            dimension_semantics=("parallel",),
            vmem_limit_bytes=vmem_limit,
        ),
        cost_estimate=cost,
    )(x2, w2, b2)

    return out.reshape(orig_shape)


def rmsnorm_ref(x, weight, bias, eps=1e-8):
    x32 = x.astype(jnp.float32)
    d = x.shape[-1]
    mean = jnp.mean(x32, axis=-1, keepdims=True)
    var = jnp.sum((x32 - mean) ** 2, axis=-1, keepdims=True) / (d - 1)
    std = jnp.sqrt(var)
    return (weight * (x32 - mean) / (std + eps) + bias).astype(x.dtype)


if __name__ == "__main__":
    # Shapes consistent with the module: hidden dim = 4096, small batch/seq.
    batch, seq, dim = 2, 8, 4096
    eps = 1e-8

    key = jax.random.PRNGKey(0)
    x = jax.random.normal(key, (batch, seq, dim), dtype=jnp.float32)

    # Deterministic parameter init per the module's __init__
    weight = jnp.ones((dim,), dtype=jnp.float32)
    bias = jnp.zeros((dim,), dtype=jnp.float32)

    out = jax.block_until_ready(rmsnorm(x, weight, bias, eps=eps))
    ref = rmsnorm_ref(x, weight, bias, eps=eps)
    assert out.shape == x.shape and out.dtype == x.dtype
    assert jnp.allclose(out, ref, atol=2e-5, rtol=2e-5), "mismatch vs reference"

    # Non-divisible row count exercises the masked edge-block path (single block).
    x_odd = jax.random.normal(jax.random.PRNGKey(1), (3, 5, dim), dtype=jnp.float32)
    out_odd = jax.block_until_ready(rmsnorm(x_odd, weight, bias, eps=eps))
    ref_odd = rmsnorm_ref(x_odd, weight, bias, eps=eps)
    assert jnp.allclose(out_odd, ref_odd, atol=2e-5, rtol=2e-5), "mismatch (edge block)"

    # Multi-block + partial last block (rows not a multiple of the row tile).
    x_multi = jax.random.normal(jax.random.PRNGKey(2), (1, 37, dim), dtype=jnp.float32)
    out_multi = jax.block_until_ready(rmsnorm(x_multi, weight, bias, eps=eps))
    ref_multi = rmsnorm_ref(x_multi, weight, bias, eps=eps)
    assert jnp.allclose(out_multi, ref_multi, atol=2e-5, rtol=2e-5), "mismatch (multi-block)"

    print("KERNEL_OK")
</pallas_src>

<mosaic_0001>
module attributes {stable_mosaic.version = 11 : i64} {
  func.func @_layernorm_kernel(%arg0: i32, %arg1: memref<8x4096xf32, #tpu.memory_space<vmem>>, %arg2: memref<1x4096xf32, #tpu.memory_space<vmem>>, %arg3: memref<1x4096xf32, #tpu.memory_space<vmem>>, %arg4: memref<8x4096xf32, #tpu.memory_space<vmem>>) attributes {dimension_semantics = [#tpu.dimension_semantics<parallel>], iteration_bounds = array<i64: 2>, scalar_prefetch = 0 : i64, scratch_operands = 0 : i64, tpu.core_type = #tpu.core_type<tc>, window_params = [{transform_indices = @transform_0, window_bounds = array<i64: 8, 4096>}, {pipeline_mode = #tpu.pipeline_mode<synchronous>, transform_indices = @transform_1, window_bounds = array<i64: 1, 4096>}, {pipeline_mode = #tpu.pipeline_mode<synchronous>, transform_indices = @transform_2, window_bounds = array<i64: 1, 4096>}, {transform_indices = @transform_3, window_bounds = array<i64: 8, 4096>}]} {
    %c0 = arith.constant 0 : index
    %c0_0 = arith.constant 0 : index
    %0 = vector.load %arg1[%c0, %c0_0] : memref<8x4096xf32, #tpu.memory_space<vmem>>, vector<8x4096xf32>
    %cst = arith.constant dense<0.000000e+00> : vector<8xf32>
    %1 = vector.multi_reduction <add>, %0, %cst [1] : vector<8x4096xf32> to vector<8xf32>
    %2 = vector.shape_cast %1 : vector<8xf32> to vector<8x1xf32>
    %cst_1 = arith.constant 4.096000e+03 : f32
    %3 = vector.broadcast %cst_1 : f32 to vector<8x1xf32>
    %4 = arith.divf %2, %3 : vector<8x1xf32>
    %5 = vector.broadcast %4 : vector<8x1xf32> to vector<8x4096xf32>
    %6 = arith.subf %0, %5 : vector<8x4096xf32>
    %7 = arith.mulf %6, %6 : vector<8x4096xf32>
    %cst_2 = arith.constant dense<0.000000e+00> : vector<8xf32>
    %8 = vector.multi_reduction <add>, %7, %cst_2 [1] : vector<8x4096xf32> to vector<8xf32>
    %9 = vector.shape_cast %8 : vector<8xf32> to vector<8x1xf32>
    %cst_3 = arith.constant 2.44200259E-4 : f32
    %10 = vector.broadcast %cst_3 : f32 to vector<8x1xf32>
    %11 = arith.mulf %9, %10 : vector<8x1xf32>
    %12 = math.sqrt %11 : vector<8x1xf32>
    %cst_4 = arith.constant 9.99999993E-9 : f32
    %13 = vector.broadcast %cst_4 : f32 to vector<8x1xf32>
    %14 = arith.addf %12, %13 : vector<8x1xf32>
    %15 = tpu.reciprocal %14 {approx = true} : vector<8x1xf32> -> vector<8x1xf32>
    %16 = arith.mulf %14, %15 : vector<8x1xf32>
    %cst_5 = arith.constant 2.000000e+00 : f32
    %17 = vector.broadcast %cst_5 : f32 to vector<8x1xf32>
    %18 = arith.subf %17, %16 : vector<8x1xf32>
    %19 = arith.mulf %15, %18 : vector<8x1xf32>
    %c0_6 = arith.constant 0 : index
    %c0_7 = arith.constant 0 : index
    %20 = vector.load %arg2[%c0_6, %c0_7] : memref<1x4096xf32, #tpu.memory_space<vmem>>, vector<1x4096xf32>
    %21 = vector.broadcast %20 : vector<1x4096xf32> to vector<8x4096xf32>
    %22 = vector.broadcast %19 : vector<8x1xf32> to vector<8x4096xf32>
    %23 = arith.mulf %21, %22 : vector<8x4096xf32>
    %24 = arith.mulf %6, %23 : vector<8x4096xf32>
    %c0_8 = arith.constant 0 : index
    %c0_9 = arith.constant 0 : index
    %25 = vector.load %arg3[%c0_8, %c0_9] : memref<1x4096xf32, #tpu.memory_space<vmem>>, vector<1x4096xf32>
    %26 = vector.broadcast %25 : vector<1x4096xf32> to vector<8x4096xf32>
    %27 = arith.addf %24, %26 : vector<8x4096xf32>
    %c0_10 = arith.constant 0 : index
    %c0_11 = arith.constant 0 : index
    %28 = vector.load %arg4[%c0_10, %c0_11] : memref<8x4096xf32, #tpu.memory_space<vmem>>, vector<8x4096xf32>
    tpu.vector_store %arg4[%c0_10, %c0_11], %27 {strides = array<i32>} : memref<8x4096xf32, #tpu.memory_space<vmem>>, vector<8x4096xf32>,
    return
  }
  func.func @transform_0(%arg0: i32) -> (i32, i32) {
    %c0_i32 = arith.constant 0 : i32
    %c0_i32_0 = arith.constant 0 : i32
    return %arg0, %c0_i32 : i32, i32
  }
  func.func @transform_1(%arg0: i32) -> (i32, i32) {
    %c0_i32 = arith.constant 0 : i32
    %c0_i32_0 = arith.constant 0 : i32
    %c0_i32_1 = arith.constant 0 : i32
    return %c0_i32, %c0_i32_0 : i32, i32
  }
  func.func @transform_2(%arg0: i32) -> (i32, i32) {
    %c0_i32 = arith.constant 0 : i32
    %c0_i32_0 = arith.constant 0 : i32
    %c0_i32_1 = arith.constant 0 : i32
    return %c0_i32, %c0_i32_0 : i32, i32
  }
  func.func @transform_3(%arg0: i32) -> (i32, i32) {
    %c0_i32 = arith.constant 0 : i32
    %c0_i32_0 = arith.constant 0 : i32
    return %arg0, %c0_i32 : i32, i32
  }
}

</mosaic_0001>

<bundles_post_ra>
// kernel: tpu_custom_call.1
= control target key start
LH: loop header
LB: loop body
LE: loop exit
PB: predicated region body
PF: predicated region fallthrough
CT: control target
= control target key end

     0   :  { %8 = vsyncpa [#allocation3], 0  ;;  %s2202_s0 = inlined_call_operand.hbm [shape: f32[16,4096], index: 0, kind: input, shape index: {}]   ;;  %s2203_s1 = inlined_call_operand.hbm [shape: f32[1,4096], index: 1, kind: input, shape index: {}]   ;;  %s2204_s2 = inlined_call_operand.hbm [shape: f32[1,4096], index: 2, kind: input, shape index: {}]   ;;  %s2205_s3 = inlined_call_operand.hbm [shape: f32[16,4096], index: 3, kind: output, shape index: {}]  }
   0x1   :  { %10 = vsyncpa [#allocation3 + $0x1], 0 }
   0x2   :  { %11 = vsyncpa [#allocation6], 0 }
   0x3   :  { %12 = vsyncpa [#allocation4], 0 }
   0x4   :  { %14 = vsyncpa [#allocation4 + $0x1], 0  ;;  %s1230_s12 = smov 0   ;;  %s1232_s13 = smov 0  }
   0x5   :  { %s1234_s14 = smov 0   ;;  %s1236_s15 = smov 0  }
   0x6 LB: > { %s1251_s16 = sadd.s32 4294967295, %s1204_s15   ;;  %s957_s17 = sadd.s32 4294967294, %s1204_s15   ;;  %s1204_s15 = sphi %s1236_s15, %s2366_s15   ;;  %s1200_s14 = sphi %s1234_s14, %s2365_s14   ;;  %s1196_s13 = sphi %s1232_s13, %s2364_s13   ;;  %s1192_s12 = sphi %s1230_s12, %s2363_s12  }
   0x7   : > { %p40_p0 = scmp.ne.s32.totalorder %s1196_s13, %s1192_s12  ;;  %p2206_p1 = scmp.eq.s32.totalorder %s1251_s16, 0 }
   0x8   : > { %p112_p3 = scmp.eq.s32.totalorder %s957_s17, 1  ;;  %p958_p5 = scmp.ge.s32.totalorder %s1204_s15, 1 }
   0x9   : > { %p1260_p4 = por %p2206_p1, %p40_p0  ;;  %p119_p7 = scmp.lt.s32.totalorder %s1204_s15, 3 }
   0xa   : > { %p1265_p6 = por %p112_p3, %p40_p0  ;;  %s1206_s21 = smov [#allocation5]  }
   0xb   : > { %s2244_s18 = scalar_select %p1260_p4, 1, 0 }
   0xc   : > { %s2245_s19 = scalar_select %p1265_p6, 1, 0 }
   0xd   : > { %p1270_p8 = pnand %p958_p5, %p119_p7  ;;  %s132_s22 = sshll.u32 %s1206_s21, 4  ;;  %s133_s22 = int_to_ptr.vmem [resolvable:$true] %s132_s22 }
   0xe   : > { %s1207_s23 = smov [#allocation7]   ;;  %s1286_s26 = sadd.s32 1, %s1204_s15  }
   0xf   : > { %s2246_s20 = scalar_select %p1270_p8, 1, 0 }
  0x10   : > { %p989_p10 = pneg %p1270_p8  ;;  %s143_s24 = sshll.u32 %s1207_s23, 4  ;;  %s1283_s24 = int_to_ptr.vmem [resolvable:$true] %s143_s24 }
  0x11   : > { %s24_s27 = ssub.s32 %s1204_s15, %s1286_s26  ;;  %s1048_s30 = scalar_lea.hbm %s2203_s1, 512 }
  0x12   : > { %p1279_p11 = pnand %p989_p10, %p2206_p1  ;;  %p1049_p12 = scmp.ne.s32.totalorder %s2203_s1, %s1048_s30 }
  0x13   : > { %p1055_p5 = scmp.lt.u32.totalorder %s1048_s30, %s2203_s1 }
  0x14   : > { %p1050_p13 = pneg %p1279_p11 }
  0x16   : > { %p1051_p0 = pnand %p1050_p13, %p1049_p12 }
  0x18   : > { %p1052_p3 = pneg %p1051_p0 }
  0x1a   : > { %p1057_p7 = pnand %p1055_p5, %p1052_p3 }
  0x1c   : > { %1060 = shalt.err (!%p1057_p7)
}
  0x1d   : > { %s1061_s8 = scalar_lea.vmem %s133_s22, 512  ;;  %p1069_p2 = scmp.lt.s32.totalorder %s133_s22, %s133_s22 }
  0x1e   : > { %p1062_p10 = scmp.ne.s32.totalorder %s133_s22, %s1061_s8  ;;  %p1070_p6 = scmp.lt.s32.totalorder %s1061_s8, %s1061_s8 }
  0x20   : > { %p1064_p9 = pnand %p1062_p10, %p1050_p13  ;;  %p1071_p4 = por %p1070_p6, %p1069_p2 }
  0x22   : > { %p1065_p1 = pneg %p1064_p9 }
  0x24   : > { %p1072_p8 = pnand %p1071_p4, %p1065_p1 }
  0x26   : > { %1075 = shalt.err (!%p1072_p8)
}
  0x27   : > { %992 = dma.hbm_to_vmem [thread:$0]  (!%p1279_p11), %s2203_s1, 512, %s133_s22, [#allocation6]  }
  0x28   : > { %s1076_s21 = scalar_lea.hbm %s2204_s2, 512 }
  0x29   : > { %p1077_p9 = scmp.ne.s32.totalorder %s2204_s2, %s1076_s21  ;;  %p1083_p4 = scmp.lt.u32.totalorder %s1076_s21, %s2204_s2 }
  0x2b   : > { %p1079_p2 = pnand %p1077_p9, %p1050_p13 }
  0x2d   : > { %p1080_p1 = pneg %p1079_p2 }
  0x2f   : > { %p1085_p6 = pnand %p1083_p4, %p1080_p1 }
  0x31   : > { %1088 = shalt.err (!%p1085_p6)
}
  0x32   : > { %s1089_s22 = scalar_lea.vmem %s1283_s24, 512  ;;  %p1097_p3 = scmp.lt.s32.totalorder %s1283_s24, %s1283_s24 }
  0x33   : > { %p1090_p8 = scmp.ne.s32.totalorder %s1283_s24, %s1089_s22  ;;  %p1098_p5 = scmp.lt.s32.totalorder %s1089_s22, %s1089_s22 }
  0x35   : > { %p1092_p12 = pnand %p1090_p8, %p1050_p13  ;;  %p1099_p7 = por %p1098_p5, %p1097_p3 }
  0x37   : > { %p1093_p0 = pneg %p1092_p12 }
  0x39   : > { %p1100_p10 = pnand %p1099_p7, %p1093_p0 }
  0x3b   : > { %1103 = shalt.err (!%p1100_p10)
}
  0x3c   : > { %995 = dma.hbm_to_vmem [thread:$0]  (!%p1279_p11), %s2204_s2, 512, %s1283_s24, [#allocation6]  }
  0x3d   : > { %p25_p13 = scmp.eq.s32.totalorder %s24_s27, 0  ;;  %s27_s6 = sadd.s32 1, %s1200_s14 }
  0x3e   : > { %p34_p9 = scmp.ne.s32.totalorder %s1200_s14, %s1196_s13  ;;  %p35_p2 = scmp.eq.s32.totalorder %s1204_s15, 0 }
  0x3f   : > { %s1345_s25 = scalar_select %p25_p13, %s1200_s14, %s27_s6  }
  0x40   : > { %p36_p1 = por %p35_p2, %p34_p9  ;;  %p2248_p4 = scmp.eq.s32.totalorder %s1251_s16, 1 }
  0x41   : > { %p1006_p8 = scmp.lt.s32.totalorder %s1204_s15, 2  ;;  %s154_s8 = sand.u32 1, %s1200_s14  }
  0x42   : > { %p1349_p6 = por %p2248_p4, %p34_p9  ;;  %s962_s9 = sshll.u32 %s154_s8, 8 }
  0x43   : > { %s975_s10 = sshll.u32 %s1204_s15, 12  ;;  %s158_s27 = scalar_lea.vmem [#allocation2], %s962_s9 }
  0x44   : > { %s1359_s24 = scalar_lea.hbm %s2202_s0, %s975_s10  ;;  %s166_s21 = sshll.u32 %s158_s27, 4  ;;  %s1361_s21 = int_to_ptr.vmem [resolvable:$true] %s166_s21 }
  0x45   : > { %p1363_p11 = pnand %p1006_p8, %p36_p1  ;;  %s155_s28 = scalar_lea.sflag [#allocation3], %s154_s8 }
  0x46   : > { %s1104_s29 = scalar_lea.hbm %s1359_s24, 4096  ;;  %s1109_s4 = scalar_lea.hbm %s2202_s0, 8192 }
  0x47   : > { %p1105_p12 = scmp.ne.s32.totalorder %s1359_s24, %s1104_s29  ;;  %p1106_p0 = pneg %p1363_p11 }
  0x48   : > { %p1110_p7 = scmp.lt.u32.totalorder %s1359_s24, %s2202_s0  ;;  %p1111_p10 = scmp.lt.u32.totalorder %s1109_s4, %s1104_s29 }
  0x49   : > { %p1107_p3 = pnand %p1106_p0, %p1105_p12  ;;  %p1113_p9 = scmp.lt.u32.totalorder %s1104_s29, %s1359_s24 }
  0x4a   : > { %p1112_p13 = por %p1111_p10, %p1110_p7 }
  0x4b   : > { %p1108_p5 = pneg %p1107_p3 }
  0x4c   : > { %p1114_p2 = por %p1113_p9, %p1112_p13 }
  0x4e   : > { %p1115_p1 = pnand %p1114_p2, %p1108_p5 }
  0x50   : > { %1118 = shalt.err (!%p1115_p1)
}
  0x51   : > { %s1119_s8 = scalar_lea.vmem %s1361_s21, 4096  ;;  %s1208_s9 = smov [#allocation2]  }
  0x52   : > { %p1120_p4 = scmp.ne.s32.totalorder %s1361_s21, %s1119_s8  ;;  %s1124_s10 = sshll.u32 %s1208_s9, 4  ;;  %s1125_s10 = int_to_ptr.vmem [resolvable:$false] %s1124_s10 }
  0x53   : > { %s1126_s11 = scalar_lea.vmem %s1125_s10, 8192  ;;  %p1127_p3 = scmp.lt.s32.totalorder %s1361_s21, %s1125_s10 }
  0x54   : > { %p1122_p8 = pnand %p1120_p4, %p1106_p0  ;;  %p1128_p7 = scmp.lt.s32.totalorder %s1126_s11, %s1119_s8 }
  0x56   : > { %p1123_p12 = pneg %p1122_p8  ;;  %p1129_p10 = por %p1128_p7, %p1127_p3 }
  0x58   : > { %p1130_p13 = pnand %p1129_p10, %p1123_p12 }
  0x5a   : > { %1133 = shalt.err (!%p1130_p13)
}
  0x5b   : > { %999 = dma.hbm_to_vmem [thread:$0]  (!%p1363_p11), %s1359_s24, 4096, %s1361_s21, %s155_s28  }
  0x5c   : > { %p2251_p5 = scmp.ne.s32.totalorder %s2246_s20, 0 }
  0x5e   : > { %175 = sbr.rel (%p2251_p5) target bundleno = 613 (0x265), region = 32 }
  0x65   : > { %s1395_s17 = sand.u32 1, %s1196_s13   ;;  %p2252_p0 = scmp.ne.s32.totalorder %s2244_s18, 0 }
  0x66   : > { %s966_s27 = sshll.u32 %s1395_s17, 8  ;;  %s178_s29 = scalar_lea.sflag [#allocation3], %s1395_s17 }
  0x67   : > { %s1401_s30 = scalar_lea.vmem [#allocation2], %s966_s27 }
  0x68   : > { %1179 = dma.done.wait (%p2252_p0), %s178_s29, 4096  }
  0x69   : > { %1181 = vsyncadd (%p2252_p0), %s178_s29, 4294963200  ;;  %p2253_p11 = scmp.eq.s32.totalorder %s1251_s16, 0 }
  0x6b   : > { %1183 = dma.done.wait (%p2253_p11), [#allocation6], 1024   ;;  %p2254_p9 = pmov %p2253_p11 }
  0x6c   : > { %v1412_v0 = vld [vmem:[%s1401_s30] sm:$0xff]  ;;  %v1415_v1 = vld [vmem:[%s1401_s30 + $0x8] sm:$0xff]  ;;  %v1418_v2 = vld [vmem:[%s1401_s30 + $0x10] sm:$0xff]  ;;  %s2059_s18 = scalar_lea.vmem [#allocation8], %s966_s27  ;;  %s976_s20 = sshll.u32 %s1251_s16, 12 }
  0x6d   : > { %1185 = vsyncadd (%p2254_p9), [#allocation6], 4294966272  ;;  %v244_v3 = vadd.f32 %v1415_v1, %v1412_v0  ;;  %v1423_v4 = vld [vmem:[%s1401_s30 + $0x18] sm:$0xff]  ;;  %v1427_v6 = vld [vmem:[%s1401_s30 + $0x20] sm:$0xff]  ;;  %s868_s24 = sshll.u32 %s2059_s18, 4  ;;  %s2150_s23 = scalar_lea.hbm %s2205_s3, %s976_s20  ;;  %s2152_s24 = int_to_ptr.vmem [resolvable:$true] %s868_s24 }
  0x6e   : > { %v1431_v8 = vld [vmem:[%s1401_s30 + $0x28] sm:$0xff]  ;;  %v1435_v10 = vld [vmem:[%s1401_s30 + $0x30] sm:$0xff]  ;;  %v1439_v12 = vld [vmem:[%s1401_s30 + $0x38] sm:$0xff]  ;;  %s854_s28 = scalar_lea.sflag [#allocation4], %s1395_s17  ;;  %s1134_s22 = scalar_lea.vmem %s2152_s24, 4096 }
  0x6f   : > { %v245_v5 = vadd.f32 %v244_v3, %v1418_v2  ;;  %v1443_v14 = vld [vmem:[%s1401_s30 + $0x40] sm:$0xff]  ;;  %v1447_v16 = vld [vmem:[%s1401_s30 + $0x48] sm:$0xff]  ;;  %v1451_v18 = vld [vmem:[%s1401_s30 + $0x50] sm:$0xff]  ;;  %p1135_p2 = scmp.ne.s32.totalorder %s2152_s24, %s1134_s22  ;;  %s1209_s4 = smov [#allocation8]  }
  0x70   : > { %v1455_v20 = vld [vmem:[%s1401_s30 + $0x58] sm:$0xff]  ;;  %v1459_v22 = vld [vmem:[%s1401_s30 + $0x60] sm:$0xff]  ;;  %v1463_v24 = vld [vmem:[%s1401_s30 + $0x68] sm:$0xff]  ;;  %s1138_s5 = sshll.u32 %s1209_s4, 4  ;;  %s1139_s5 = int_to_ptr.vmem [resolvable:$false] %s1138_s5 }
  0x71   : > { %v246_v7 = vadd.f32 %v245_v5, %v1423_v4  ;;  %v1467_v26 = vld [vmem:[%s1401_s30 + $0x70] sm:$0xff]  ;;  %v1471_v28 = vld [vmem:[%s1401_s30 + $0x78] sm:$0xff]  ;;  %v1475_v30 = vld [vmem:[%s1401_s30 + $0x80] sm:$0xff]  ;;  %p1136_p1 = pnand %p1135_p2, %p1349_p6  ;;  %s1140_s6 = scalar_lea.vmem %s1139_s5, 8192 }
  0x72   : > { %v1479_v32 = vld [vmem:[%s1401_s30 + $0x88] sm:$0xff]  ;;  %v1483_v34 = vld [vmem:[%s1401_s30 + $0x90] sm:$0xff]  ;;  %v1487_v36 = vld [vmem:[%s1401_s30 + $0x98] sm:$0xff]  ;;  %p1141_p8 = scmp.lt.s32.totalorder %s2152_s24, %s1139_s5  ;;  %p1142_p12 = scmp.lt.s32.totalorder %s1140_s6, %s1134_s22 }
  0x73   : > { %v247_v9 = vadd.f32 %v246_v7, %v1427_v6  ;;  %v1491_v38 = vld [vmem:[%s1401_s30 + $0xa0] sm:$0xff]  ;;  %v1495_v40 = vld [vmem:[%s1401_s30 + $0xa8] sm:$0xff]  ;;  %v1499_v42 = vld [vmem:[%s1401_s30 + $0xb0] sm:$0xff]  ;;  %p1137_p4 = pneg %p1136_p1 }
  0x74   : > { %v1503_v44 = vld [vmem:[%s1401_s30 + $0xb8] sm:$0xff]  ;;  %v1507_v46 = vld [vmem:[%s1401_s30 + $0xc0] sm:$0xff]  ;;  %v1511_v48 = vld [vmem:[%s1401_s30 + $0xc8] sm:$0xff]  ;;  %p1143_p3 = por %p1142_p12, %p1141_p8 }
  0x75   : > { %v248_v11 = vadd.f32 %v247_v9, %v1431_v8  ;;  %v1515_v50 = vld [vmem:[%s1401_s30 + $0xd0] sm:$0xff]  ;;  %v1519_v52 = vld [vmem:[%s1401_s30 + $0xd8] sm:$0xff]  ;;  %v1523_v54 = vld [vmem:[%s1401_s30 + $0xe0] sm:$0xff] }
  0x76   : > { %v1527_v56 = vld [vmem:[%s1401_s30 + $0xe8] sm:$0xff]  ;;  %v1531_v58 = vld [vmem:[%s1401_s30 + $0xf0] sm:$0xff]  ;;  %v1535_v60 = vld [vmem:[%s1401_s30 + $0xf8] sm:$0xff]  ;;  %p1144_p7 = pnand %p1143_p3, %p1137_p4 }
  0x77   : > { %v249_v13 = vadd.f32 %v248_v11, %v1435_v10 }
  0x79   : > { %v250_v15 = vadd.f32 %v249_v13, %v1439_v12 }
  0x7b   : > { %v251_v17 = vadd.f32 %v250_v15, %v1443_v14 }
  0x7d   : > { %v252_v19 = vadd.f32 %v251_v17, %v1447_v16 }
  0x7f   : > { %v253_v21 = vadd.f32 %v252_v19, %v1451_v18 }
  0x81   : > { %v254_v23 = vadd.f32 %v253_v21, %v1455_v20 }
  0x83   : > { %v255_v25 = vadd.f32 %v254_v23, %v1459_v22 }
  0x85   : > { %v256_v27 = vadd.f32 %v255_v25, %v1463_v24 }
  0x87   : > { %v257_v29 = vadd.f32 %v256_v27, %v1467_v26 }
  0x89   : > { %v258_v31 = vadd.f32 %v257_v29, %v1471_v28 }
  0x8b   : > { %v259_v33 = vadd.f32 %v258_v31, %v1475_v30 }
  0x8d   : > { %v260_v35 = vadd.f32 %v259_v33, %v1479_v32 }
  0x8f   : > { %v261_v37 = vadd.f32 %v260_v35, %v1483_v34 }
  0x91   : > { %v262_v39 = vadd.f32 %v261_v37, %v1487_v36 }
  0x93   : > { %v263_v41 = vadd.f32 %v262_v39, %v1491_v38 }
  0x95   : > { %v264_v43 = vadd.f32 %v263_v41, %v1495_v40 }
  0x97   : > { %v265_v45 = vadd.f32 %v264_v43, %v1499_v42 }
  0x99   : > { %v266_v47 = vadd.f32 %v265_v45, %v1503_v44 }
  0x9b   : > { %v267_v49 = vadd.f32 %v266_v47, %v1507_v46 }
  0x9d   : > { %v268_v51 = vadd.f32 %v267_v49, %v1511_v48 }
  0x9f   : > { %v269_v53 = vadd.f32 %v268_v51, %v1515_v50 }
  0xa1   : > { %v270_v55 = vadd.f32 %v269_v53, %v1519_v52 }
  0xa3   : > { %v271_v57 = vadd.f32 %v270_v55, %v1523_v54 }
  0xa5   : > { %v272_v59 = vadd.f32 %v271_v57, %v1527_v56 }
  0xa7   : > { %v273_v61 = vadd.f32 %v272_v59, %v1531_v58 }
  0xa9   : > { %v274_v62 = vadd.f32 %v273_v61, %v1535_v60 }
  0xab   : > { %275 = vadd.xlane.f32.xlu0 %v274_v62 }
 0x138   : > { %v276_v63 = vpop.xlane.xlu0 %275 }
 0x139   : > { %v1539_v3 = vmul.f32 0.00024414063, %v276_v63 }
 0x13b   : > { %v1543_v5 = vsub.f32 %v1412_v0, %v1539_v3  ;;  %v1547_v7 = vsub.f32 %v1415_v1, %v1539_v3  ;;  %v1551_v9 = vsub.f32 %v1418_v2, %v1539_v3  ;;  %v1559_v15 = vsub.f32 %v1423_v4, %v1539_v3 }
 0x13c   : > { %v1563_v0 = vsub.f32 %v1427_v6, %v1539_v3  ;;  %v1569_v2 = vsub.f32 %v1431_v8, %v1539_v3  ;;  %v1575_v4 = vsub.f32 %v1435_v10, %v1539_v3  ;;  %v1581_v25 = vsub.f32 %v1439_v12, %v1539_v3 }
 0x13d   : > { %v311_v11 = vmul.f32 %v1543_v5, %v1543_v5  ;;  %v312_v13 = vmul.f32 %v1547_v7, %v1547_v7  ;;  %v313_v1 = vmul.f32 %v1551_v9, %v1551_v9  ;;  %v314_v19 = vmul.f32 %v1559_v15, %v1559_v15 }
 0x13e   : > { %v315_v6 = vmul.f32 %v1563_v0, %v1563_v0  ;;  %v316_v8 = vmul.f32 %v1569_v2, %v1569_v2  ;;  %v1587_v29 = vsub.f32 %v1443_v14, %v1539_v3  ;;  %v317_v10 = vmul.f32 %v1575_v4, %v1575_v4 }
 0x13f   : > { %v343_v17 = vadd.f32 %v312_v13, %v311_v11  ;;  %v1593_v33 = vsub.f32 %v1447_v16, %v1539_v3  ;;  %v318_v12 = vmul.f32 %v1581_v25, %v1581_v25  ;;  %v1599_v37 = vsub.f32 %v1451_v18, %v1539_v3 }
 0x140   : > { %v319_v14 = vmul.f32 %v1587_v29, %v1587_v29  ;;  %v1605_v41 = vsub.f32 %v1455_v20, %v1539_v3  ;;  %v1611_v45 = vsub.f32 %v1459_v22, %v1539_v3  ;;  %v1617_v49 = vsub.f32 %v1463_v24, %v1539_v3 }
 0x141   : > { %v344_v21 = vadd.f32 %v343_v17, %v313_v1  ;;  %v320_v16 = vmul.f32 %v1593_v33, %v1593_v33  ;;  %v321_v18 = vmul.f32 %v1599_v37, %v1599_v37  ;;  %v1623_v53 = vsub.f32 %v1467_v26, %v1539_v3 }
 0x142   : > { %v322_v20 = vmul.f32 %v1605_v41, %v1605_v41  ;;  %v323_v22 = vmul.f32 %v1611_v45, %v1611_v45  ;;  %v1629_v57 = vsub.f32 %v1471_v28, %v1539_v3  ;;  %v324_v24 = vmul.f32 %v1617_v49, %v1617_v49 }
 0x143   : > { %v345_v23 = vadd.f32 %v344_v21, %v314_v19  ;;  %v1635_v61 = vsub.f32 %v1475_v30, %v1539_v3  ;;  %v325_v26 = vmul.f32 %v1623_v53, %v1623_v53  ;;  %v1641_v63 = vsub.f32 %v1479_v32, %v1539_v3 }
 0x144   : > { %v326_v28 = vmul.f32 %v1629_v57, %v1629_v57  ;;  %v1647_v13 = vsub.f32 %v1483_v34, %v1539_v3  ;;  %v1653_v17 = vsub.f32 %v1487_v36, %v1539_v3  ;;  %v1659_v21 = vsub.f32 %v1491_v38, %v1539_v3 }
 0x145   : > { %v346_v27 = vadd.f32 %v345_v23, %v315_v6  ;;  %v327_v30 = vmul.f32 %v1635_v61, %v1635_v61  ;;  %v328_v32 = vmul.f32 %v1641_v63, %v1641_v63  ;;  %v1665_v23 = vsub.f32 %v1495_v40, %v1539_v3 }
 0x146   : > { %2255 = vst [vmem:[#allocation12_spill] sm:$0xff] %v1653_v17  ;;  %2256 = vst [vmem:[#allocation13_spill] sm:$0xff] %v1659_v21  ;;  %v329_v34 = vmul.f32 %v1647_v13, %v1647_v13  ;;  %v330_v36 = vmul.f32 %v1653_v17, %v1653_v17  ;;  %v331_v38 = vmul.f32 %v1659_v21, %v1659_v21 }
 0x147   : > { %v347_v31 = vadd.f32 %v346_v27, %v316_v8  ;;  %2257 = vst [vmem:[#allocation14_spill] sm:$0xff] %v1665_v23  ;;  %v1671_v27 = vsub.f32 %v1499_v42, %v1539_v3  ;;  %v332_v40 = vmul.f32 %v1665_v23, %v1665_v23 }
 0x149   : > { %v348_v35 = vadd.f32 %v347_v31, %v317_v10  ;;  %2258 = vst [vmem:[#allocation15_spill] sm:$0xff] %v1671_v27  ;;  %v1677_v31 = vsub.f32 %v1503_v44, %v1539_v3  ;;  %v333_v42 = vmul.f32 %v1671_v27, %v1671_v27 }
 0x14b   : > { %v349_v39 = vadd.f32 %v348_v35, %v318_v12  ;;  %2259 = vst [vmem:[#allocation16_spill] sm:$0xff] %v1677_v31  ;;  %v1683_v35 = vsub.f32 %v1507_v46, %v1539_v3  ;;  %v334_v44 = vmul.f32 %v1677_v31, %v1677_v31 }
 0x14d   : > { %v350_v43 = vadd.f32 %v349_v39, %v319_v14  ;;  %2260 = vst [vmem:[#allocation17_spill] sm:$0xff] %v1683_v35  ;;  %v1689_v39 = vsub.f32 %v1511_v48, %v1539_v3  ;;  %v335_v46 = vmul.f32 %v1683_v35, %v1683_v35 }
 0x14f   : > { %v351_v47 = vadd.f32 %v350_v43, %v320_v16  ;;  %2261 = vst [vmem:[#allocation18_spill] sm:$0xff] %v1689_v39  ;;  %v1695_v43 = vsub.f32 %v1515_v50, %v1539_v3  ;;  %v336_v48 = vmul.f32 %v1689_v39, %v1689_v39 }
 0x151   : > { %v352_v51 = vadd.f32 %v351_v47, %v321_v18  ;;  %2262 = vst [vmem:[#allocation19_spill] sm:$0xff] %v1695_v43  ;;  %v1701_v47 = vsub.f32 %v1519_v52, %v1539_v3  ;;  %v337_v50 = vmul.f32 %v1695_v43, %v1695_v43 }
 0x153   : > { %v353_v55 = vadd.f32 %v352_v51, %v322_v20  ;;  %2263 = vst [vmem:[#allocation20_spill] sm:$0xff] %v1701_v47  ;;  %v1707_v51 = vsub.f32 %v1523_v54, %v1539_v3  ;;  %v338_v52 = vmul.f32 %v1701_v47, %v1701_v47 }
 0x155   : > { %v354_v59 = vadd.f32 %v353_v55, %v323_v22  ;;  %2264 = vst [vmem:[#allocation21_spill] sm:$0xff] %v1707_v51  ;;  %v1713_v55 = vsub.f32 %v1527_v56, %v1539_v3  ;;  %v339_v54 = vmul.f32 %v1707_v51, %v1707_v51 }
 0x157   : > { %v355_v62 = vadd.f32 %v354_v59, %v324_v24  ;;  %2265 = vst [vmem:[#allocation22_spill] sm:$0xff] %v1713_v55  ;;  %v1719_v59 = vsub.f32 %v1531_v58, %v1539_v3  ;;  %v340_v56 = vmul.f32 %v1713_v55, %v1713_v55 }
 0x159   : > { %v356_v11 = vadd.f32 %v355_v62, %v325_v26  ;;  %2266 = vst [vmem:[#allocation23_spill] sm:$0xff] %v1719_v59  ;;  %v1725_v62 = vsub.f32 %v1535_v60, %v1539_v3 }
 0x15b   : > { %v357_v1 = vadd.f32 %v356_v11, %v326_v28  ;;  %2267 = vst [vmem:[#allocation24_spill] sm:$0xff] %v1725_v62  ;;  %v341_v11 = vmul.f32 %v1719_v59, %v1719_v59  ;;  %v342_v58 = vmul.f32 %v1725_v62, %v1725_v62 }
 0x15d   : > { %v358_v19 = vadd.f32 %v357_v1, %v327_v30 }
 0x15f   : > { %v359_v6 = vadd.f32 %v358_v19, %v328_v32 }
 0x161   : > { %v360_v8 = vadd.f32 %v359_v6, %v329_v34  ;;  %v397_v6 = vlaneseq }
 0x163   : > { %v361_v10 = vadd.f32 %v360_v8, %v330_v36  ;;  %v398_v60 = vshrl.u32 %v397_v6, 7 }
 0x165   : > { %v362_v12 = vadd.f32 %v361_v10, %v331_v38  ;;  %v1733_v38 = vsub.s32 0, %v398_v60  ;;  %v1735_v10 = vsub.s32 1, %v398_v60 }
 0x167   : > { %v363_v14 = vadd.f32 %v362_v12, %v332_v40  ;;  %2268 = vst [vmem:[#allocation25_spill] sm:$0xff] %v1733_v38  ;;  %2269 = vst [vmem:[#allocation26_spill] sm:$0xff] %v1735_v10  ;;  %v1737_v12 = vsub.s32 2, %v398_v60 }
 0x169   : > { %v364_v16 = vadd.f32 %v363_v14, %v333_v42  ;;  %2270 = vst [vmem:[#allocation27_spill] sm:$0xff] %v1737_v12  ;;  %v1739_v42 = vsub.s32 3, %v398_v60 }
 0x16b   : > { %v365_v18 = vadd.f32 %v364_v16, %v334_v44  ;;  %2271 = vst [vmem:[#allocation28_spill] sm:$0xff] %v1739_v42  ;;  %v1741_v44 = vld [vmem:[#allocation5] sm:$0xff]  ;;  %v1743_v16 = vsub.s32 4, %v398_v60 }
 0x16d   : > { %v366_v20 = vadd.f32 %v365_v18, %v335_v46  ;;  %2272 = vst [vmem:[#allocation29_spill] sm:$0xff] %v1743_v16  ;;  %v1745_v46 = vsub.s32 5, %v398_v60  ;;  %v1747_v18 = vsub.s32 6, %v398_v60 }
 0x16f   : > { %v367_v22 = vadd.f32 %v366_v20, %v336_v48  ;;  %2273 = vst [vmem:[#allocation30_spill] sm:$0xff] %v1745_v46  ;;  %2274 = vst [vmem:[#allocation31_spill] sm:$0xff] %v1747_v18  ;;  %v1749_v20 = vld [vmem:[#allocation5 + $0x8] sm:$0xff] }
 0x170   : > { %v2281_v6 = vrot.slane %v1749_v20, %v1733_v38 }
 0x171   : > { %v368_v24 = vadd.f32 %v367_v22, %v337_v50  ;;  %v1751_v50 = vsub.s32 7, %v398_v60  ;;  %v400_v22 = vrot.slane %v1741_v44, %v1733_v38 }
 0x173   : > { %v369_v26 = vadd.f32 %v368_v24, %v338_v52  ;;  %v404_v52 = vrot.slane %v1741_v44, %v1735_v10  ;;  %v408_v24 = vrot.slane %v1741_v44, %v1737_v12  ;;  %v2280_v60 = vrot.slane %v1741_v44, %v1751_v50 }
 0x174   : > { %v2288_v62 = vrot.slane %v1749_v20, %v1751_v50 }
 0x175   : > { %v370_v28 = vadd.f32 %v369_v26, %v339_v54  ;;  %v1759_v54 = vld [vmem:[#allocation5 + $0x10] sm:$0xff]  ;;  %v412_v26 = vrot.slane %v1741_v44, %v1739_v42 }
 0x176   : > { %v2289_v59 = vrot.slane %v1759_v54, %v1733_v38  ;;  %v2290_v55 = vrot.slane %v1759_v54, %v1735_v10  ;;  %v2291_v51 = vrot.slane %v1759_v54, %v1737_v12  ;;  %v2292_v47 = vrot.slane %v1759_v54, %v1739_v42 }
 0x177   : > { %v371_v30 = vadd.f32 %v370_v28, %v340_v56  ;;  %v416_v56 = vrot.slane %v1741_v44, %v1743_v16  ;;  %v420_v28 = vrot.slane %v1741_v44, %v1745_v46  ;;  %v2294_v43 = vrot.slane %v1759_v54, %v1745_v46 }
 0x178   : > { %v2295_v39 = vrot.slane %v1759_v54, %v1747_v18  ;;  %v2296_v35 = vrot.slane %v1759_v54, %v1751_v50 }
 0x179   : > { %v372_v1 = vadd.f32 %v371_v30, %v341_v11 }
 0x17b   : > { %v373_v32 = vadd.f32 %v372_v1, %v342_v58  ;;  %v1821_v1 = vld [vmem:[#allocation7 + $0x8] sm:$0xff] }
 0x17c   : > { %2276 = vst [vmem:[#allocation33_spill] sm:$0xff] %v1821_v1  ;;  %v2286_v1 = vrot.slane %v1749_v20, %v1745_v46 }
 0x17d   : > { %374 = vadd.xlane.f32.xlu0 %v373_v32  ;;  %v1803_v32 = vld [vmem:[#allocation7] sm:$0xff] }
 0x17e   : > { %2275 = vst [vmem:[#allocation32_spill] sm:$0xff] %v1803_v32  ;;  %v2287_v32 = vrot.slane %v1749_v20, %v1747_v18 }
 0x20a   : > { %v375_v19 = vpop.xlane.xlu0 %374 }
 0x20b   : > { %v376_v34 = vmul.f32 0.00024420026, %v375_v19  ;;  %v1777_v19 = vld [vmem:[#allocation5 + $0x18] sm:$0xff] }
 0x20c   : > { %v2297_v31 = vrot.slane %v1777_v19, %v1733_v38  ;;  %v2298_v27 = vrot.slane %v1777_v19, %v1735_v10  ;;  %v2299_v23 = vrot.slane %v1777_v19, %v1737_v12  ;;  %v2300_v21 = vrot.slane %v1777_v19, %v1739_v42 }
 0x20d   : > { %1044 = vrsqrt.f32 %v376_v34  ;;  %vm379_vm0 = vcmp.eq.f32.partialorder %v376_v34, inf  ;;  %v382_v8 = vand.u32 2147483648, %v376_v34  ;;  %vm381_vm1 = vcmp.eq.f32.partialorder %v376_v34, 0.0 }
 0x20e   : > { %v2302_v38 = vrot.slane %v1777_v19, %v1745_v46 }
 0x217   : > { %v1045_v3 = vpop.eup %1044 }
 0x218   : > { %v378_v36 = vmul.f32 %v1045_v3, %v376_v34 }
 0x21a   : > { %v380_v40 = vsel %vm379_vm0, %v376_v34, %v378_v36  ;;  %v1849_v34 = vld [vmem:[#allocation7 + $0x18] sm:$0xff] }
 0x21b   : > { %v383_v14 = vsel %vm381_vm1, %v382_v8, %v380_v40  ;;  %2278 = vst [vmem:[#allocation35_spill] sm:$0xff] %v1849_v34  ;;  %v2283_v34 = vrot.slane %v1749_v20, %v1737_v12  ;;  %v2304_v12 = vrot.slane %v1777_v19, %v1751_v50 }
 0x21c   : > { %v384_v48 = vadd.f32 1e-08, %v383_v14  ;;  %v1831_v14 = vld [vmem:[#allocation7 + $0x10] sm:$0xff] }
 0x21d   : > { %2277 = vst [vmem:[#allocation34_spill] sm:$0xff] %v1831_v14  ;;  %v2284_v14 = vrot.slane %v1749_v20, %v1739_v42 }
 0x21e   : > { %1046 = vrcp.f32 %v384_v48 }
 0x228   : > { %v1047_v58 = vpop.eup %1046 }
 0x229   : > { %v386_v40 = vmul.f32 %v1047_v58, %v384_v48  ;;  %v2279_v48 = vrot.slane %v1741_v44, %v1747_v18  ;;  %v2285_v44 = vrot.slane %v1749_v20, %v1743_v16 }
 0x22b   : > { %v387_v11 = vsub.f32 2.0, %v386_v40  ;;  %v2282_v40 = vrot.slane %v1749_v20, %v1735_v10  ;;  %v2293_v20 = vrot.slane %v1759_v54, %v1743_v16  ;;  %v2301_v54 = vrot.slane %v1777_v19, %v1743_v16 }
 0x22c   : > { %v2303_v10 = vrot.slane %v1777_v19, %v1747_v18  ;;  %v2306_v19 = vld [vmem:[#allocation13_spill] sm:$0xff] }
 0x22d   : > { %v388_v8 = vmul.f32 %v1047_v58, %v387_v11 }
 0x22f   : > { %v557_v58 = vmul.f32 %v400_v22, %v388_v8  ;;  %v558_v3 = vmul.f32 %v404_v52, %v388_v8  ;;  %v559_v36 = vmul.f32 %v408_v24, %v388_v8  ;;  %v560_v30 = vmul.f32 %v412_v26, %v388_v8 }
 0x230   : > { %v561_v11 = vmul.f32 %v416_v56, %v388_v8  ;;  %v562_v22 = vmul.f32 %v420_v28, %v388_v8  ;;  %v563_v52 = vmul.f32 %v2279_v48, %v388_v8  ;;  %v564_v24 = vmul.f32 %v2280_v60, %v388_v8 }
 0x231   : > { %v565_v26 = vmul.f32 %v2281_v6, %v388_v8  ;;  %v566_v56 = vmul.f32 %v2282_v40, %v388_v8  ;;  %v567_v28 = vmul.f32 %v2283_v34, %v388_v8  ;;  %v568_v48 = vmul.f32 %v2284_v14, %v388_v8 }
 0x232   : > { %v569_v60 = vmul.f32 %v2285_v44, %v388_v8  ;;  %v570_v6 = vmul.f32 %v2286_v1, %v388_v8  ;;  %v571_v40 = vmul.f32 %v2287_v32, %v388_v8  ;;  %v572_v34 = vmul.f32 %v2288_v62, %v388_v8 }
 0x233   : > { %v573_v14 = vmul.f32 %v2289_v59, %v388_v8  ;;  %v574_v44 = vmul.f32 %v2290_v55, %v388_v8  ;;  %v575_v1 = vmul.f32 %v2291_v51, %v388_v8  ;;  %v576_v32 = vmul.f32 %v2292_v47, %v388_v8 }
 0x234   : > { %v577_v62 = vmul.f32 %v2293_v20, %v388_v8  ;;  %v578_v59 = vmul.f32 %v2294_v43, %v388_v8  ;;  %v579_v55 = vmul.f32 %v2295_v39, %v388_v8  ;;  %v580_v51 = vmul.f32 %v2296_v35, %v388_v8 }
 0x235   : > { %v581_v47 = vmul.f32 %v2297_v31, %v388_v8  ;;  %v582_v20 = vmul.f32 %v2298_v27, %v388_v8  ;;  %v583_v43 = vmul.f32 %v2299_v23, %v388_v8  ;;  %v584_v39 = vmul.f32 %v2300_v21, %v388_v8 }
 0x236   : > { %v585_v35 = vmul.f32 %v2301_v54, %v388_v8  ;;  %v586_v31 = vmul.f32 %v2302_v38, %v388_v8  ;;  %v587_v27 = vmul.f32 %v2303_v10, %v388_v8  ;;  %v588_v23 = vmul.f32 %v2304_v12, %v388_v8  ;;  %v2309_v8 = vld [vmem:[#allocation16_spill] sm:$0xff] }
 0x237   : > { %v589_v17 = vmul.f32 %v557_v58, %v1543_v5  ;;  %v590_v21 = vmul.f32 %v558_v3, %v1547_v7  ;;  %v591_v42 = vmul.f32 %v559_v36, %v1551_v9  ;;  %v592_v54 = vmul.f32 %v560_v30, %v1559_v15  ;;  %v2305_v30 = vld [vmem:[#allocation12_spill] sm:$0xff]  ;;  %v2307_v3 = vld [vmem:[#allocation14_spill] sm:$0xff]  ;;  %v2308_v36 = vld [vmem:[#allocation15_spill] sm:$0xff] }
 0x238   : > { %v593_v16 = vmul.f32 %v561_v11, %v1563_v0  ;;  %v594_v38 = vmul.f32 %v562_v22, %v1569_v2  ;;  %v595_v46 = vmul.f32 %v563_v52, %v1575_v4  ;;  %v596_v10 = vmul.f32 %v564_v24, %v1581_v25  ;;  %v2310_v11 = vld [vmem:[#allocation17_spill] sm:$0xff]  ;;  %v2311_v58 = vld [vmem:[#allocation18_spill] sm:$0xff]  ;;  %v2312_v22 = vld [vmem:[#allocation19_spill] sm:$0xff] }
 0x239   : > { %v597_v18 = vmul.f32 %v565_v26, %v1587_v29  ;;  %v598_v12 = vmul.f32 %v566_v56, %v1593_v33  ;;  %v599_v5 = vmul.f32 %v567_v28, %v1599_v37  ;;  %v600_v7 = vmul.f32 %v568_v48, %v1605_v41  ;;  %v2313_v52 = vld [vmem:[#allocation20_spill] sm:$0xff]  ;;  %v2314_v24 = vld [vmem:[#allocation21_spill] sm:$0xff]  ;;  %v2315_v26 = vld [vmem:[#allocation22_spill] sm:$0xff] }
 0x23a   : > { %v601_v9 = vmul.f32 %v569_v60, %v1611_v45  ;;  %v602_v15 = vmul.f32 %v570_v6, %v1617_v49  ;;  %v603_v0 = vmul.f32 %v571_v40, %v1623_v53  ;;  %v604_v2 = vmul.f32 %v572_v34, %v1629_v57  ;;  %v2316_v28 = vld [vmem:[#allocation23_spill] sm:$0xff]  ;;  %v2317_v60 = vld [vmem:[#allocation24_spill] sm:$0xff]  ;;  %v2319_v34 = vld [vmem:[#allocation25_spill] sm:$0xff] }
 0x23b   : > { %v605_v4 = vmul.f32 %v573_v14, %v1635_v61  ;;  %v606_v25 = vmul.f32 %v574_v44, %v1641_v63  ;;  %v607_v29 = vmul.f32 %v575_v1, %v1647_v13  ;;  %v608_v33 = vmul.f32 %v576_v32, %v2305_v30  ;;  %v2318_v40 = vld [vmem:[#allocation32_spill] sm:$0xff]  ;;  %v2321_v1 = vld [vmem:[#allocation26_spill] sm:$0xff]  ;;  %v2331_v30 = vld [vmem:[#allocation31_spill] sm:$0xff] }
 0x23c   : > { %v609_v37 = vmul.f32 %v577_v62, %v2306_v19  ;;  %v610_v41 = vmul.f32 %v578_v59, %v2307_v3  ;;  %v611_v45 = vmul.f32 %v579_v55, %v2308_v36  ;;  %v612_v49 = vmul.f32 %v580_v51, %v2309_v8  ;;  %v2323_v59 = vld [vmem:[#allocation27_spill] sm:$0xff]  ;;  %v2334_v36 = vld [vmem:[#allocation33_spill] sm:$0xff] }
 0x23d   : > { %v613_v53 = vmul.f32 %v581_v47, %v2310_v11  ;;  %v614_v57 = vmul.f32 %v582_v20, %v2311_v58  ;;  %v615_v61 = vmul.f32 %v583_v43, %v2312_v22  ;;  %v616_v63 = vmul.f32 %v584_v39, %v2313_v52  ;;  %v2325_v47 = vld [vmem:[#allocation28_spill] sm:$0xff]  ;;  %v2327_v39 = vld [vmem:[#allocation29_spill] sm:$0xff] }
 0x23e   : > { %v617_v13 = vmul.f32 %v585_v35, %v2314_v24  ;;  %v618_v56 = vmul.f32 %v586_v31, %v2315_v26  ;;  %v619_v48 = vmul.f32 %v587_v27, %v2316_v28  ;;  %v620_v6 = vmul.f32 %v588_v23, %v2317_v60  ;;  %v2329_v27 = vld [vmem:[#allocation30_spill] sm:$0xff] }
 0x23f   : > { %v2320_v14 = vrot.slane %v2318_v40, %v2319_v34  ;;  %v2322_v32 = vrot.slane %v2318_v40, %v2321_v1  ;;  %v2324_v55 = vrot.slane %v2318_v40, %v2323_v59  ;;  %v2326_v20 = vrot.slane %v2318_v40, %v2325_v47 }
 0x240   : > { %v2328_v35 = vrot.slane %v2318_v40, %v2327_v39  ;;  %v2330_v23 = vrot.slane %v2318_v40, %v2329_v27  ;;  %v2332_v19 = vrot.slane %v2318_v40, %v2331_v30  ;;  %v2333_v3 = vrot.slane %v2318_v40, %v1751_v50 }
 0x241   : > { %v789_v44 = vadd.f32 %v2320_v14, %v589_v17  ;;  %v790_v62 = vadd.f32 %v2322_v32, %v590_v21  ;;  %v791_v51 = vadd.f32 %v2324_v55, %v591_v42  ;;  %v792_v43 = vadd.f32 %v2326_v20, %v592_v54 }
 0x242   : > { %v793_v31 = vadd.f32 %v2328_v35, %v593_v16  ;;  %v794_v17 = vadd.f32 %v2330_v23, %v594_v38  ;;  %v795_v21 = vadd.f32 %v2332_v19, %v595_v46  ;;  %v796_v42 = vadd.f32 %v2333_v3, %v596_v10 }
 0x243   : > { %v2335_v8 = vrot.slane %v2334_v36, %v2319_v34  ;;  %v2336_v11 = vrot.slane %v2334_v36, %v2321_v1  ;;  %v2337_v58 = vrot.slane %v2334_v36, %v2323_v59  ;;  %v2338_v22 = vrot.slane %v2334_v36, %v2325_v47  ;;  %821 = vst [vmem:[%s2059_s18] sm:$0xff] %v789_v44 }
 0x244   : > { %822 = vst [vmem:[%s2059_s18 + $0x8] sm:$0xff] %v790_v62  ;;  %823 = vst [vmem:[%s2059_s18 + $0x10] sm:$0xff] %v791_v51  ;;  %v2342_v24 = vrot.slane %v2334_v36, %v1751_v50 }
 0x245   : > { %v797_v54 = vadd.f32 %v2335_v8, %v597_v18  ;;  %v798_v16 = vadd.f32 %v2336_v11, %v598_v12  ;;  %v799_v38 = vadd.f32 %v2337_v58, %v599_v5  ;;  %v800_v46 = vadd.f32 %v2338_v22, %v600_v7  ;;  %824 = vst [vmem:[%s2059_s18 + $0x18] sm:$0xff] %v792_v43 }
 0x246   : > { %v2339_v18 = vrot.slane %v2334_v36, %v2327_v39  ;;  %v2340_v12 = vrot.slane %v2334_v36, %v2329_v27  ;;  %v2341_v7 = vrot.slane %v2334_v36, %v2331_v30  ;;  %v804_v26 = vadd.f32 %v2342_v24, %v604_v2  ;;  %825 = vst [vmem:[%s2059_s18 + $0x20] sm:$0xff] %v793_v31 }
 0x247   : > { %826 = vst [vmem:[%s2059_s18 + $0x28] sm:$0xff] %v794_v17  ;;  %827 = vst [vmem:[%s2059_s18 + $0x30] sm:$0xff] %v795_v21 }
 0x248   : > { %v801_v10 = vadd.f32 %v2339_v18, %v601_v9  ;;  %v802_v5 = vadd.f32 %v2340_v12, %v602_v15  ;;  %v803_v52 = vadd.f32 %v2341_v7, %v603_v0  ;;  %828 = vst [vmem:[%s2059_s18 + $0x38] sm:$0xff] %v796_v42  ;;  %v2343_v9 = vld [vmem:[#allocation34_spill] sm:$0xff]  ;;  %829 = vst [vmem:[%s2059_s18 + $0x40] sm:$0xff] %v797_v54 }
 0x249   : > { %v2344_v28 = vrot.slane %v2343_v9, %v2319_v34  ;;  %v2345_v15 = vrot.slane %v2343_v9, %v2321_v1  ;;  %v2346_v0 = vrot.slane %v2343_v9, %v2323_v59  ;;  %v2347_v14 = vrot.slane %v2343_v9, %v2325_v47  ;;  %830 = vst [vmem:[%s2059_s18 + $0x48] sm:$0xff] %v798_v16 }
 0x24a   : > { %831 = vst [vmem:[%s2059_s18 + $0x50] sm:$0xff] %v799_v38  ;;  %832 = vst [vmem:[%s2059_s18 + $0x58] sm:$0xff] %v800_v46  ;;  %v2351_v55 = vrot.slane %v2343_v9, %v1751_v50 }
 0x24b   : > { %v805_v60 = vadd.f32 %v2344_v28, %v605_v4  ;;  %v806_v40 = vadd.f32 %v2345_v15, %v606_v25  ;;  %v807_v2 = vadd.f32 %v2346_v0, %v607_v29  ;;  %v808_v44 = vadd.f32 %v2347_v14, %v608_v33  ;;  %833 = vst [vmem:[%s2059_s18 + $0x60] sm:$0xff] %v801_v10 }
 0x24c   : > { %v2348_v4 = vrot.slane %v2343_v9, %v2327_v39  ;;  %v2349_v29 = vrot.slane %v2343_v9, %v2329_v27  ;;  %v2350_v33 = vrot.slane %v2343_v9, %v2331_v30  ;;  %v812_v51 = vadd.f32 %v2351_v55, %v612_v49  ;;  %834 = vst [vmem:[%s2059_s18 + $0x68] sm:$0xff] %v802_v5 }
 0x24d   : > { %835 = vst [vmem:[%s2059_s18 + $0x70] sm:$0xff] %v803_v52  ;;  %836 = vst [vmem:[%s2059_s18 + $0x78] sm:$0xff] %v804_v26 }
 0x24e   : > { %v809_v25 = vadd.f32 %v2348_v4, %v609_v37  ;;  %v810_v32 = vadd.f32 %v2349_v29, %v610_v41  ;;  %v811_v62 = vadd.f32 %v2350_v33, %v611_v45  ;;  %v2352_v37 = vld [vmem:[#allocation35_spill] sm:$0xff]  ;;  %837 = vst [vmem:[%s2059_s18 + $0x80] sm:$0xff] %v805_v60  ;;  %838 = vst [vmem:[%s2059_s18 + $0x88] sm:$0xff] %v806_v40 }
 0x24f   : > { %v2353_v20 = vrot.slane %v2352_v37, %v2319_v34  ;;  %v2354_v43 = vrot.slane %v2352_v37, %v2321_v1  ;;  %v2355_v35 = vrot.slane %v2352_v37, %v2323_v59  ;;  %v2356_v31 = vrot.slane %v2352_v37, %v2325_v47  ;;  %839 = vst [vmem:[%s2059_s18 + $0x90] sm:$0xff] %v807_v2 }
 0x250   : > { %840 = vst [vmem:[%s2059_s18 + $0x98] sm:$0xff] %v808_v44  ;;  %v2360_v59 = vrot.slane %v2352_v37, %v1751_v50  ;;  %841 = vst [vmem:[%s2059_s18 + $0xa0] sm:$0xff] %v809_v25 }
 0x251   : > { %v813_v41 = vadd.f32 %v2353_v20, %v613_v53  ;;  %v814_v45 = vadd.f32 %v2354_v43, %v614_v57  ;;  %v815_v49 = vadd.f32 %v2355_v35, %v615_v61  ;;  %v816_v23 = vadd.f32 %v2356_v31, %v616_v63  ;;  %842 = vst [vmem:[%s2059_s18 + $0xa8] sm:$0xff] %v810_v32 }
 0x252   : > { %v2357_v53 = vrot.slane %v2352_v37, %v2327_v39  ;;  %v2358_v61 = vrot.slane %v2352_v37, %v2329_v27  ;;  %v2359_v63 = vrot.slane %v2352_v37, %v2331_v30  ;;  %v820_v47 = vadd.f32 %v2360_v59, %v620_v6  ;;  %843 = vst [vmem:[%s2059_s18 + $0xb0] sm:$0xff] %v811_v62 }
 0x253   : > { %844 = vst [vmem:[%s2059_s18 + $0xb8] sm:$0xff] %v812_v51  ;;  %845 = vst [vmem:[%s2059_s18 + $0xc0] sm:$0xff] %v813_v41 }
 0x254   : > { %v817_v57 = vadd.f32 %v2357_v53, %v617_v13  ;;  %v818_v34 = vadd.f32 %v2358_v61, %v618_v56  ;;  %v819_v1 = vadd.f32 %v2359_v63, %v619_v48  ;;  %846 = vst [vmem:[%s2059_s18 + $0xc8] sm:$0xff] %v814_v45  ;;  %847 = vst [vmem:[%s2059_s18 + $0xd0] sm:$0xff] %v815_v49 }
 0x255   : > { %848 = vst [vmem:[%s2059_s18 + $0xd8] sm:$0xff] %v816_v23  ;;  %852 = vst [vmem:[%s2059_s18 + $0xf8] sm:$0xff] %v820_v47 }
 0x256   : > { %849 = vst [vmem:[%s2059_s18 + $0xe0] sm:$0xff] %v817_v57  ;;  %850 = vst [vmem:[%s2059_s18 + $0xe8] sm:$0xff] %v818_v34 }
 0x257   : > { %851 = vst [vmem:[%s2059_s18 + $0xf0] sm:$0xff] %v819_v1 }
 0x258   : > { %1147 = shalt.err (!%p1144_p7)
}
 0x259   : > { %s1148_s8 = scalar_lea.hbm %s2150_s23, 4096  ;;  %s1152_s11 = scalar_lea.hbm %s2205_s3, 8192 }
 0x25a   : > { %p1149_p10 = scmp.ne.s32.totalorder %s2150_s23, %s1148_s8  ;;  %p1153_p0 = scmp.lt.u32.totalorder %s2150_s23, %s2205_s3 }
 0x25b   : > { %p1154_p11 = scmp.lt.u32.totalorder %s1152_s11, %s1148_s8  ;;  %p1156_p2 = scmp.lt.u32.totalorder %s1148_s8, %s2150_s23 }
 0x25c   : > { %p1150_p13 = pnand %p1149_p10, %p1349_p6 }
 0x25d   : > { %p1155_p9 = por %p1154_p11, %p1153_p0 }
 0x25e   : > { %p1151_p5 = pneg %p1150_p13 }
 0x25f   : > { %p1157_p1 = por %p1156_p2, %p1155_p9 }
 0x261   : > { %p1158_p4 = pnand %p1157_p1, %p1151_p5 }
 0x263   : > { %1161 = shalt.err (!%p1158_p4)
}
 0x264   : > { %987 = dma.vmem_to_hbm [thread:$0]  (%p1349_p6), %s2152_s24, 4096, %s2150_s23, %s854_s28  }
 0x265 PF: > { %s880_s29 = sand.u32 1, %s1192_s12   ;;  %p2361_p8 = scmp.ne.s32.totalorder %s2245_s19, 0 }
 0x266   : > { %p2362_p12 = scmp.ge.s32.totalorder %s1204_s15, 2  ;;  %s881_s30 = scalar_lea.sflag [#allocation4], %s880_s29 }
 0x268   : > { %p1001_p3 = pnand %p2362_p12, %p2361_p8 }
 0x26a   : > { %1187 = dma.done.wait (!%p1001_p3), %s881_s30, 4096  }
 0x26b   : > { %1189 = vsyncadd (!%p1001_p3), %s881_s30, 4294963200  ;;  %p17_p7 = scmp.ge.s32.totalorder %s1286_s26, 4   ;;  %s2363_s12 = smov %s1196_s13 }
 0x26c   : > { %s2364_s13 = smov %s1200_s14  ;;  %s2365_s14 = smov %s1345_s25 }
 0x26d   : > { %s2366_s15 = smov %s1286_s26  ;;  %19 = sbr.rel (!%p17_p7) target bundleno = 6 (0x6), region = 85 }
 0x274   :  { %886 = vsyncpa [#allocation3], 1 }
 0x275   :  { %888 = vsyncpa [#allocation3 + $0x1], 1 }
 0x276   :  { %889 = vsyncpa [#allocation6], 1 }
 0x277   :  { %890 = vsyncpa [#allocation4], 1 }
 0x278   :  { %892 = vsyncpa [#allocation4 + $0x1], 1 }

</bundles_post_ra>
